<compile_context>
chip_gen: v6e
topology: v6e:2x2x1
jax: 0.10.0
libtpu: 0.0.40
codegen_flags: <defaults>
</compile_context>

<pallas_src>
import jax
import jax.numpy as jnp
from jax.experimental import pallas as pl
from jax.experimental.pallas import tpu as pltpu


# ----------------------------------------------------------------------------
# Plain-JAX glue: edge-matrix normalization and masked batch norm
# ----------------------------------------------------------------------------
def batch_mat_chan_norm(e):
    """D^{-1/2} (A + I) D^{-1/2} per channel.  e: [B, N, N, C]."""
    N = e.shape[1]
    eye = jnp.eye(N, dtype=e.dtype)[None, :, :, None]            # broadcast over B, C
    A = e + eye
    s = 1.0 / jnp.sqrt(jnp.sum(A, axis=-2))                      # [B, N, C] (sum over j)
    return s[:, :, None, :] * A * s[:, None, :, :]


def masked_batchnorm(x_flat, mask_flat, gamma, beta, eps=1e-5, out_dtype=None):
    """MaskedBatchNorm1d (training-mode batch statistics over masked rows).
    out_dtype lets the final cast fuse into the same XLA elementwise op (so the
    kernel input is written to HBM once, already in bf16)."""
    m = (mask_flat > 0).astype(x_flat.dtype)[:, None]            # [M, 1]
    cnt = jnp.maximum(jnp.sum(m), 1.0)
    mean = jnp.sum(x_flat * m, axis=0, keepdims=True) / cnt
    var = jnp.sum(((x_flat - mean) ** 2) * m, axis=0, keepdims=True) / cnt
    y = ((x_flat - mean) / jnp.sqrt(var + eps) * gamma[None, :] + beta[None, :]) * m
    if out_dtype is not None:
        y = y.astype(out_dtype)
    return y


def _round_up(x, m):
    return (x + m - 1) // m * m


# ----------------------------------------------------------------------------
# Pallas kernels
#   pass 1 (stats only):  h = relu(x @ W1 + b1); per-tile sum + M2 about tile mean
#   pass 2 (apply):       out = relu(x @ W1 + b1) . w2'  + b2'     (BN folded)
# ----------------------------------------------------------------------------
def _mlp_stats_kernel(x_ref, w1_ref, b1_ref, sum_ref, m2_ref):
    # bf16 x / bf16 W1 into the MXU, f32 accumulate.
    h = jnp.dot(x_ref[...], w1_ref[...], preferred_element_type=jnp.float32)
    h = jnp.maximum(h + b1_ref[...], 0.0)
    s = jnp.sum(h, axis=0, keepdims=True)                        # (1, H)
    d = h - s * (1.0 / h.shape[0])                               # dev. from tile mean
    sum_ref[...] = s[None]                                       # (1, 1, H)
    m2_ref[...] = jnp.sum(d * d, axis=0, keepdims=True)[None]    # (1, 1, H)


def _mlp_head_kernel(x_ref, w1_ref, b1_ref, w2_ref, b2_ref, o_ref):
    h = jnp.dot(x_ref[...], w1_ref[...], preferred_element_type=jnp.float32)
    h = jnp.maximum(h + b1_ref[...], 0.0)
    if o_ref.shape[-1] == 1:
        # dim_out == 1: keep the projection off the MXU (N dim would be ~1/256
        # utilized).  VPU multiply by the folded (1, H) w2 row + XLU lane-reduce,
        # all in f32 (better precision than a decomposed f32 MXU dot).
        o_ref[...] = jnp.sum(h * w2_ref[...], axis=-1, keepdims=True) + b2_ref[...]
    else:
        o_ref[...] = (jnp.dot(h.astype(jnp.bfloat16),
                              w2_ref[...].astype(jnp.bfloat16),
                              preferred_element_type=jnp.float32) + b2_ref[...])


def fused_mlp_head(x_all, w1, b1, bn_gamma, bn_beta, w2, b2, *, tm=2048, eps=1e-5):
    """relu(x@W1+b1) -> BatchNorm1d (training-mode stats over all rows of x_all)
    -> @W2+b2, applied to every row.  Returns [M, dim_out] f32."""
    M, D = x_all.shape
    H = w1.shape[1]
    dim_out = w2.shape[1]

    # ---- tiling: big row tiles, but keep >= 2 grid steps (v7x has 2 TCs) ----
    nt = max(2, -(-M // tm))                     # desired number of tiles
    tmb = _round_up(-(-M // nt), 8)              # rows per tile (8-aligned)
    nt = -(-M // tmb)                            # re-derive: last tile never all-pad
    Mp = nt * tmb
    npad = Mp - M

    xa = x_all if x_all.dtype == jnp.bfloat16 else x_all.astype(jnp.bfloat16)
    if npad:                                     # bf16 pad, only when M doesn't divide
        xa = jnp.pad(xa, ((0, npad), (0, 0)))

    w1_b = w1.astype(jnp.bfloat16)
    b1_r = b1.reshape(1, H).astype(jnp.float32)

    # ---- pass 1: per-tile partial statistics over ALL rows (stats only) ----
    psum, pm2 = pl.pallas_call(
        _mlp_stats_kernel,
        out_shape=(jax.ShapeDtypeStruct((nt, 1, H), jnp.float32),
                   jax.ShapeDtypeStruct((nt, 1, H), jnp.float32)),
        grid_spec=pltpu.PrefetchScalarGridSpec(
            num_scalar_prefetch=0,
            grid=(nt,),
            in_specs=[pl.BlockSpec((tmb, D), lambda i: (i, 0)),
                      pl.BlockSpec((D, H), lambda i: (0, 0)),
                      pl.BlockSpec((1, H), lambda i: (0, 0))],
            out_specs=[pl.BlockSpec((1, 1, H), lambda i: (i, 0, 0)),
                       pl.BlockSpec((1, 1, H), lambda i: (i, 0, 0))]),
        compiler_params=pltpu.CompilerParams(
            dimension_semantics=("parallel",)),
    )(xa, w1_b, b1_r)

    s = psum[:, 0, :]                            # (nt, H) tile sums
    q = pm2[:, 0, :]                             # (nt, H) tile M2 (about tile mean)
    cnt = jnp.full((nt, 1), float(tmb), jnp.float32)
    if npad:
        # Padded rows (zero x) produce exactly relu(b1); correct the last tile's
        # sum / M2 in JAX instead of masking inside the hot loop.
        rb = jnp.maximum(b1.astype(jnp.float32), 0.0)
        n_last = tmb - npad                      # >= 1 by construction
        mu_raw = s[-1] / tmb
        s_last = s[-1] - npad * rb
        mu_val = s_last / n_last
        q_last = (q[-1] - npad * (rb - mu_raw) ** 2
                  - n_last * (mu_val - mu_raw) ** 2)
        s = s.at[-1].set(s_last)
        q = q.at[-1].set(q_last)
        cnt = cnt.at[-1, 0].set(float(n_last))

    # Chan parallel-variance combine (numerically stable, all tiny [nt, H] ops).
    mean = jnp.sum(s, axis=0) / M
    mu_i = s / cnt
    m2 = jnp.sum(q + cnt * (mu_i - mean) ** 2, axis=0)
    var = jnp.maximum(m2 / M, 0.0)               # biased var (training-mode BN)
    invstd = jax.lax.rsqrt(var + eps)

    # ---- fold the BN affine into the output projection ----
    scale = invstd * bn_gamma                                    # [H]
    shift = bn_beta - mean * scale                               # [H]
    if dim_out == 1:
        w2_in = (scale * w2[:, 0]).reshape(1, H).astype(jnp.float32)
        b2_in = (b2[0] + jnp.dot(shift, w2[:, 0])).reshape(1, 1).astype(jnp.float32)
        w2_spec = pl.BlockSpec((1, H), lambda i: (0, 0))
        b2_spec = pl.BlockSpec((1, 1), lambda i: (0, 0))
    else:
        w2_in = (scale[:, None] * w2).astype(jnp.float32)
        b2_in = (b2 + shift @ w2).reshape(1, dim_out).astype(jnp.float32)
        w2_spec = pl.BlockSpec((H, dim_out), lambda i: (0, 0))
        b2_spec = pl.BlockSpec((1, dim_out), lambda i: (0, 0))

    # ---- pass 2: apply the head to every row (re-reads the same padded xa;
    #      the tiny triu gather happens on the [M, dim_out] output instead) ----
    out = pl.pallas_call(
        _mlp_head_kernel,
        out_shape=jax.ShapeDtypeStruct((Mp, dim_out), jnp.float32),
        grid_spec=pltpu.PrefetchScalarGridSpec(
            num_scalar_prefetch=0,
            grid=(nt,),
            in_specs=[pl.BlockSpec((tmb, D), lambda i: (i, 0)),
                      pl.BlockSpec((D, H), lambda i: (0, 0)),
                      pl.BlockSpec((1, H), lambda i: (0, 0)),
                      w2_spec, b2_spec],
            out_specs=pl.BlockSpec((tmb, dim_out), lambda i: (i, 0))),
        compiler_params=pltpu.CompilerParams(
            dimension_semantics=("parallel",)),
    )(xa, w1_b, b1_r, w2_in, b2_in)
    return out[:M]


# ----------------------------------------------------------------------------
# Full MPMLPOutNet forward
# ----------------------------------------------------------------------------
def _preprocess(v_in, e_in, vert_mask, p, feat_dtype=jnp.float32):
    """Everything up to (and including) e_bn_pre_mlp.  Pure JAX.
    feat_dtype controls the dtype of the emitted e_new (bf16 for the kernel path,
    f32 for the reference) — the cast fuses into the BN-apply op."""
    B, N, Fv = v_in.shape
    Fe = e_in.shape[-1]
    D = p["w1"].shape[0]                                         # internal_d_vert

    v_mask = vert_mask[..., None]                                          # [B, N, 1]
    e_mask = (vert_mask[:, :, None] * vert_mask[:, None, :])[..., None]    # [B, N, N, 1]

    # edge_mat_norm
    e_norm = batch_mat_chan_norm(e_in)

    # input masked batch norms
    v_bn = masked_batchnorm(v_in.reshape(-1, Fv), v_mask.reshape(-1),
                            p["v_bn_gamma"], p["v_bn_beta"]).reshape(v_in.shape)
    e_bn = masked_batchnorm(e_norm.reshape(-1, Fe), e_mask.reshape(-1),
                            p["e_bn_gamma"], p["e_bn_beta"]).reshape(e_norm.shape)

    # pad last dim to internal_d_vert and apply masks
    v = jnp.pad(v_bn, ((0, 0), (0, 0), (0, D - Fv))) * v_mask
    e = jnp.pad(e_bn, ((0, 0), (0, 0), (0, 0), (0, D - Fe))) * e_mask

    # TODO(synk): EVMP message-passing module (create_mp({'name': 'EVMP'})) is not
    # defined in the reference source; identity pass-through used here.
    e_new, v = e, v

    # e_bn_pre_mlp: masked batch norm on edge features; output written in feat_dtype.
    e_new = masked_batchnorm(e_new.reshape(-1, D), e_mask.reshape(-1),
                             p["pre_bn_gamma"], p["pre_bn_beta"],
                             out_dtype=feat_dtype).reshape(B, N, N, D)
    return e_new


def mpmlp_out_net_forward(v_in, e_in, vert_mask, p, *, tm=2048):
    B, N, _ = v_in.shape
    D = p["w1"].shape[0]
    dim_out = p["w2"].shape[1]

    # preprocessing emits e_new directly in bf16 (no separate astype round trip)
    e_new = _preprocess(v_in, e_in, vert_mask, p, feat_dtype=jnp.bfloat16)
    x_all = e_new.reshape(B * N * N, D)                          # free reshape

    out = fused_mlp_head(x_all, p["w1"], p["b1"],
                         p["mlp_bn_gamma"], p["mlp_bn_beta"],
                         p["w2"], p["b2"], tm=tm)                # [B*N*N, dim_out]

    # upper-triangle (k=1) gather on the tiny output, not on the [Ms, D] input
    triu_idx = jnp.array([i * N + j for i in range(N) for j in range(i + 1, N)],
                         dtype=jnp.int32)
    out = out.reshape(B, N * N, dim_out)[:, triu_idx, :]
    return out[..., None]                                        # chan_out = 1


def mpmlp_out_net_reference(v_in, e_in, vert_mask, p, eps=1e-5):
    """Pure-JAX (f32) reference of the same forward pass, for a sanity check."""
    B, N, _ = v_in.shape
    D = p["w1"].shape[0]
    e_new = _preprocess(v_in, e_in, vert_mask, p, feat_dtype=jnp.float32)
    x = e_new.reshape(-1, D)
    h = jnp.maximum(x @ p["w1"] + p["b1"], 0.0)
    mean = jnp.mean(h, axis=0)
    var = jnp.mean((h - mean) ** 2, axis=0)                      # biased (training BN)
    hbn = (h - mean) / jnp.sqrt(var + eps) * p["mlp_bn_gamma"] + p["mlp_bn_beta"]
    o = (hbn @ p["w2"] + p["b2"]).reshape(B, N * N, -1)
    triu_idx = jnp.array([i * N + j for i in range(N) for j in range(i + 1, N)],
                         dtype=jnp.int32)
    return o[:, triu_idx, :][..., None]


# ----------------------------------------------------------------------------
if __name__ == "__main__":
    B, N = 2, 7          # M = B*N*N = 98 -> exercises the padded-tail correction
    Fv, Fe = 4, 4
    D = 64               # internal_d_vert
    H = 128              # final_d_out
    dim_out = 1

    key = jax.random.PRNGKey(0)
    ks = jax.random.split(key, 8)

    v_in = jax.random.normal(ks[0], (B, N, Fv), jnp.float32)
    # adjacency-like (non-negative) edge features: edge_mat_norm takes
    # 1/sqrt(row-sum), which matches the reference and requires positive sums.
    e_in = jax.random.uniform(ks[1], (B, N, N, Fe), jnp.float32)
    e_in = 0.5 * (e_in + jnp.swapaxes(e_in, 1, 2))               # symmetric
    vert_mask = jnp.array([[1.0] * N, [1.0] * 5 + [0.0] * (N - 5)], jnp.float32)

    params = dict(
        v_bn_gamma=jnp.ones((Fv,), jnp.float32),
        v_bn_beta=jnp.zeros((Fv,), jnp.float32),
        e_bn_gamma=jnp.ones((Fe,), jnp.float32),
        e_bn_beta=jnp.zeros((Fe,), jnp.float32),
        pre_bn_gamma=jnp.ones((D,), jnp.float32),
        pre_bn_beta=jnp.zeros((D,), jnp.float32),
        w1=0.1 * jax.random.normal(ks[2], (D, H), jnp.float32),
        b1=0.1 * jax.random.normal(ks[3], (H,), jnp.float32),
        mlp_bn_gamma=1.0 + 0.1 * jax.random.normal(ks[4], (H,), jnp.float32),
        mlp_bn_beta=0.1 * jax.random.normal(ks[5], (H,), jnp.float32),
        w2=0.1 * jax.random.normal(ks[6], (H, dim_out), jnp.float32),
        b2=0.1 * jax.random.normal(ks[7], (dim_out,), jnp.float32),
    )

    out = mpmlp_out_net_forward(v_in, e_in, vert_mask, params)
    out = jax.block_until_ready(out)

    n_triu = N * (N - 1) // 2
    assert out.shape == (B, n_triu, dim_out, 1), out.shape
    assert bool(jnp.all(jnp.isfinite(out)))

    # sanity check against the pure-JAX f32 reference (loose tol: bf16 MXU inputs)
    ref = jax.block_until_ready(mpmlp_out_net_reference(v_in, e_in, vert_mask, params))
    assert bool(jnp.allclose(out, ref, atol=5e-2, rtol=5e-2)), (
        float(jnp.max(jnp.abs(out - ref))))

    print("KERNEL_OK")
</pallas_src>

<mosaic_0001>
module attributes {stable_mosaic.version = 11 : i64} {
  func.func @_mlp_stats_kernel(%arg0: i32, %arg1: memref<56x64xbf16, #tpu.memory_space<vmem>>, %arg2: memref<64x128xbf16, #tpu.memory_space<vmem>>, %arg3: memref<1x128xf32, #tpu.memory_space<vmem>>, %arg4: memref<1x1x128xf32, #tpu.memory_space<vmem>>, %arg5: memref<1x1x128xf32, #tpu.memory_space<vmem>>) attributes {dimension_semantics = [#tpu.dimension_semantics<parallel>], iteration_bounds = array<i64: 2>, scalar_prefetch = 0 : i64, scratch_operands = 0 : i64, tpu.core_type = #tpu.core_type<tc>, window_params = [{transform_indices = @transform_0, window_bounds = array<i64: 56, 64>}, {pipeline_mode = #tpu.pipeline_mode<synchronous>, transform_indices = @transform_1, window_bounds = array<i64: 64, 128>}, {pipeline_mode = #tpu.pipeline_mode<synchronous>, transform_indices = @transform_2, window_bounds = array<i64: 1, 128>}, {transform_indices = @transform_3, window_bounds = array<i64: 1, 1, 128>}, {transform_indices = @transform_4, window_bounds = array<i64: 1, 1, 128>}]} {
    %c0 = arith.constant 0 : index
    %c0_0 = arith.constant 0 : index
    %0 = vector.load %arg1[%c0, %c0_0] : memref<56x64xbf16, #tpu.memory_space<vmem>>, vector<56x64xbf16>
    %c0_1 = arith.constant 0 : index
    %c0_2 = arith.constant 0 : index
    %1 = vector.load %arg2[%c0_1, %c0_2] : memref<64x128xbf16, #tpu.memory_space<vmem>>, vector<64x128xbf16>
    %cst = arith.constant dense<0.000000e+00> : vector<56x128xf32>
    %2 = tpu.matmul %0, %1, %cst {dimension_numbers = #tpu.dot_dimension_numbers<[1], [0], [0], [1], [0, 0, 1, 1], [], []>} : vector<56x64xbf16>, vector<64x128xbf16>, vector<56x128xf32> -> vector<56x128xf32>
    %c0_3 = arith.constant 0 : index
    %c0_4 = arith.constant 0 : index
    %3 = vector.load %arg3[%c0_3, %c0_4] : memref<1x128xf32, #tpu.memory_space<vmem>>, vector<1x128xf32>
    %4 = vector.broadcast %3 : vector<1x128xf32> to vector<56x128xf32>
    %5 = arith.addf %2, %4 : vector<56x128xf32>
    %cst_5 = arith.constant 0.000000e+00 : f32
    %6 = vector.broadcast %cst_5 : f32 to vector<56x128xf32>
    %7 = arith.maximumf %5, %6 : vector<56x128xf32>
    %cst_6 = arith.constant dense<0.000000e+00> : vector<128xf32>
    %8 = vector.multi_reduction <add>, %7, %cst_6 [0] : vector<56x128xf32> to vector<128xf32>
    %9 = vector.shape_cast %8 : vector<128xf32> to vector<1x128xf32>
    %cst_7 = arith.constant 0.0178571437 : f32
    %10 = vector.broadcast %cst_7 : f32 to vector<1x128xf32>
    %11 = arith.mulf %9, %10 : vector<1x128xf32>
    %12 = vector.broadcast %11 : vector<1x128xf32> to vector<56x128xf32>
    %13 = arith.subf %7, %12 : vector<56x128xf32>
    %14 = vector.shape_cast %9 : vector<1x128xf32> to vector<1x1x128xf32>
    %c0_8 = arith.constant 0 : index
    %c0_9 = arith.constant 0 : index
    %c0_10 = arith.constant 0 : index
    %15 = vector.load %arg4[%c0_8, %c0_9, %c0_10] : memref<1x1x128xf32, #tpu.memory_space<vmem>>, vector<1x1x128xf32>
    tpu.vector_store %arg4[%c0_8, %c0_9, %c0_10], %14 {strides = array<i32>} : memref<1x1x128xf32, #tpu.memory_space<vmem>>, vector<1x1x128xf32>,
    %16 = arith.mulf %13, %13 : vector<56x128xf32>
    %cst_11 = arith.constant dense<0.000000e+00> : vector<128xf32>
    %17 = vector.multi_reduction <add>, %16, %cst_11 [0] : vector<56x128xf32> to vector<128xf32>
    %18 = vector.shape_cast %17 : vector<128xf32> to vector<1x128xf32>
    %19 = vector.shape_cast %18 : vector<1x128xf32> to vector<1x1x128xf32>
    %c0_12 = arith.constant 0 : index
    %c0_13 = arith.constant 0 : index
    %c0_14 = arith.constant 0 : index
    %20 = vector.load %arg5[%c0_12, %c0_13, %c0_14] : memref<1x1x128xf32, #tpu.memory_space<vmem>>, vector<1x1x128xf32>
    tpu.vector_store %arg5[%c0_12, %c0_13, %c0_14], %19 {strides = array<i32>} : memref<1x1x128xf32, #tpu.memory_space<vmem>>, vector<1x1x128xf32>,
    return
  }
  func.func @transform_0(%arg0: i32) -> (i32, i32) {
    %c0_i32 = arith.constant 0 : i32
    %c0_i32_0 = arith.constant 0 : i32
    return %arg0, %c0_i32 : i32, i32
  }
  func.func @transform_1(%arg0: i32) -> (i32, i32) {
    %c0_i32 = arith.constant 0 : i32
    %c0_i32_0 = arith.constant 0 : i32
    %c0_i32_1 = arith.constant 0 : i32
    return %c0_i32, %c0_i32_0 : i32, i32
  }
  func.func @transform_2(%arg0: i32) -> (i32, i32) {
    %c0_i32 = arith.constant 0 : i32
    %c0_i32_0 = arith.constant 0 : i32
    %c0_i32_1 = arith.constant 0 : i32
    return %c0_i32, %c0_i32_0 : i32, i32
  }
  func.func @transform_3(%arg0: i32) -> (i32, i32, i32) {
    %c0_i32 = arith.constant 0 : i32
    %c0_i32_0 = arith.constant 0 : i32
    %c0_i32_1 = arith.constant 0 : i32
    return %arg0, %c0_i32, %c0_i32_0 : i32, i32, i32
  }
  func.func @transform_4(%arg0: i32) -> (i32, i32, i32) {
    %c0_i32 = arith.constant 0 : i32
    %c0_i32_0 = arith.constant 0 : i32
    %c0_i32_1 = arith.constant 0 : i32
    return %arg0, %c0_i32, %c0_i32_0 : i32, i32, i32
  }
}

</mosaic_0001>

<bundles_post_ra>
// kernel: tpu_custom_call.1
= control target key start
LH: loop header
LB: loop body
LE: loop exit
PB: predicated region body
PF: predicated region fallthrough
CT: control target
= control target key end

     0   :  { %10 = vsyncpa [#allocation3], 0  ;;  %s871_s0 = inlined_call_operand.vmem [shape: bf16[112,64], index: 0, kind: input, shape index: {}]   ;;  %s872_s1 = inlined_call_operand.vmem [shape: bf16[64,128], index: 1, kind: input, shape index: {}]   ;;  %s873_s2 = inlined_call_operand.vmem [shape: f32[1,128], index: 2, kind: input, shape index: {}]   ;;  %s874_s3 = inlined_call_operand.hbm [shape: f32[2,1,128], index: 3, kind: output, shape index: {0}]   ;;  %s875_s4 = inlined_call_operand.hbm [shape: f32[2,1,128], index: 4, kind: output, shape index: {1}]  }
   0x1   :  { %12 = vsyncpa [#allocation3 + $0x1], 0 }
   0x2   :  { %13 = vsyncpa [#allocation5], 0 }
   0x3   :  { %15 = vsyncpa [#allocation5 + $0x1], 0  ;;  %s735_s15 = smov 0   ;;  %s737_s16 = smov 0  }
   0x4   :  { %s739_s17 = smov 0   ;;  %s741_s18 = smov 0  }
   0x5 LB: > { %s756_s19 = sadd.s32 4294967295, %s706_s18   ;;  %s510_s20 = sadd.s32 4294967294, %s706_s18   ;;  %s706_s18 = sphi %s741_s18, %s881_s18   ;;  %s702_s17 = sphi %s739_s17, %s880_s17   ;;  %s698_s16 = sphi %s737_s16, %s879_s16   ;;  %s694_s15 = sphi %s735_s15, %s878_s15  }
   0x6   : > { %s760_s21 = sadd.s32 1, %s706_s18   ;;  %s96_s22 = sadd.s32 1, %s702_s17 }
   0x7   : > { %s93_s23 = ssub.s32 %s706_s18, %s760_s21  ;;  %p106_p0 = scmp.ne.s32.totalorder %s702_s17, %s698_s16 }
   0x8   : > { %p94_p1 = scmp.eq.s32.totalorder %s93_s23, 0  ;;  %p107_p2 = scmp.eq.s32.totalorder %s756_s19, 1 }
   0x9   : > { %p112_p3 = scmp.ne.s32.totalorder %s698_s16, %s694_s15  ;;  %p113_p4 = scmp.eq.s32.totalorder %s510_s20, 1 }
   0xa   : > { %s771_s24 = scalar_select %p94_p1, %s702_s17, %s96_s22  }
   0xb   : > { %p773_p5 = por %p107_p2, %p106_p0  ;;  %p777_p6 = por %p113_p4, %p112_p3 }
   0xc   : > { %p513_p7 = scmp.ge.s32.totalorder %s706_s18, 1  ;;  %p172_p8 = scmp.lt.s32.totalorder %s706_s18, 3 }
   0xe   : > { %p173_p9 = pnand %p513_p7, %p172_p8 }
   0xf   : > { %s201_s29 = smul.u32 (!%p173_p9), 7, %s756_s19  ;;  %s807_s22 = sand.u32 (!%p173_p9), 1, %s698_s16  }
  0x10   : > { %176 = sbr.rel (%p173_p9) target bundleno = 318 (0x13e), region = 32  ;;  %s528_s23 = sshll.u32 (!%p173_p9), %s756_s19, 4 }
  0x11   : > { %p202_p10 = scmp.lt.s32.totalorder (!%p173_p9), %s201_s29, 13  ;;  %s194_s27 = scalar_lea.vmem (!%p173_p9), [#allocation2], %s807_s22 }
  0x12   : > { %s414_s28 = sshll.u32 (!%p173_p9), %s194_s27, 4  ;;  %s816_s5 = scalar_lea.hbm (!%p173_p9), %s874_s3, %s528_s23  ;;  %s415_s28 = int_to_ptr.vmem [resolvable:$true] %s414_s28 }
  0x13   : > { %s398_s6 = scalar_lea.sflag (!%p173_p9), [#allocation3], %s807_s22  ;;  %s616_s7 = scalar_lea.vmem (!%p173_p9), %s415_s28, 16 }
  0x14   : > { %p617_p11 = scmp.ne.s32.totalorder (!%p173_p9), %s415_s28, %s616_s7 }
  0x15   : > { %v608_v0 = vld [vmem:[%s872_s1 + $0x18] sm:$0xff]   ;;  %v609_v1 = vld [vmem:[%s872_s1 + $0x10] sm:$0xff]   ;;  %v610_v2 = vld [vmem:[%s872_s1 + $0x8] sm:$0xff]   ;;  %s883_s29 = smov (!%p202_p10, %s201_s29), 13  ;;  %vm272_vm0 = vcmask 523264  }
  0x16   : > { %540 = vmatprep.subr.bf16.mxu0 %v608_v0  ;;  %556 = vmatprep.subr.bf16.mxu1 %v608_v0  ;;  %s514_s8 = sshll.u32 %s883_s29, 2  ;;  %v611_v3 = vld [vmem:[%s872_s1] sm:$0xff]   ;;  %p618_p12 = pnand %p617_p11, %p773_p5 }
  0x17   : > { %541 = vmatpush3.bf16.msra.mxu0 %v608_v0  ;;  %560 = vmatpush3.bf16.msra.mxu1 %v608_v0  ;;  %s205_s13 = scalar_lea.vmem %s871_s0, %s514_s8  ;;  %v515_v12 = vld [vmem:[%s873_s2] ss:$0 sm:$0xff]  ;;  %s708_s8 = smov [#allocation2]  }
  0x18   : > { %542 = vmatprep.subr.bf16.mxu0 %v609_v1  ;;  %557 = vmatprep.subr.bf16.mxu1 %v609_v1  ;;  %v612_v4 = vld [vmem:[%s205_s13] sm:$0xff]   ;;  %v614_v5 = vld [vmem:[%s205_s13 + $0x10] sm:$0xff]   ;;  %v613_v6 = vld [vmem:[%s205_s13 + $0x8] sm:$0xff]   ;;  %p619_p13 = pneg %p618_p12  ;;  %s620_s9 = sshll.u32 %s708_s8, 4  ;;  %s621_s9 = int_to_ptr.vmem [resolvable:$false] %s620_s9 }
  0x19   : > { %548 = vmatprep.mubr.msk.bf16.mxu0 %vm272_vm0, %v612_v4  ;;  %552 = vmatprep.mubr.msk.bf16.mxu1 %vm272_vm0, %v614_v5  ;;  %v615_v7 = vld [vmem:[%s205_s13 + $0x18] ss:$0 sps:$4 sm:$0xff]   ;;  %s622_s10 = scalar_lea.vmem %s621_s9, 32  ;;  %p623_p0 = scmp.lt.s32.totalorder %s415_s28, %s621_s9 }
  0x1a   : > { %p624_p1 = scmp.lt.s32.totalorder %s622_s10, %s616_s7 }
  0x1b   : > { %543 = vmatpush3.bf16.msra.mxu0 %v609_v1  ;;  %561 = vmatpush3.bf16.msra.mxu1 %v609_v1 }
  0x1c   : > { %544 = vmatprep.subr.bf16.mxu0 %v610_v2  ;;  %558 = vmatprep.subr.bf16.mxu1 %v610_v2  ;;  %p625_p2 = por %p624_p1, %p623_p0 }
  0x1e   : > { %p626_p3 = pnand %p625_p2, %p619_p13 }
  0x1f   : > { %545 = vmatpush3.bf16.msra.mxu0 %v610_v2  ;;  %562 = vmatpush3.bf16.msra.mxu1 %v610_v2 }
  0x20   : > { %546 = vmatprep.subr.bf16.mxu0 %v611_v3  ;;  %559 = vmatprep.subr.bf16.mxu1 %v611_v3 }
  0x23   : > { %547 = vmatpush3.bf16.msra.mxu0 %v611_v3  ;;  %563 = vmatpush3.bf16.msra.mxu1 %v611_v3 }
  0x26   : > { %549 = vmatmul.mubr.msk.bf16.vlgmr.msra.gmra.mxu0 %vm272_vm0, %v613_v6  ;;  %553 = vmatmul.mubr.msk.bf16.vlgmr.msra.gmra.mxu1 %vm272_vm0, %v615_v7 }
  0xe6   : > { %v550_v8 = vpop.f32.mrf.mxu0  ;;  %v554_v9 = vpop.f32.mrf.mxu1 }
  0xe7   : > { %v328_v17 = vadd.f32 %v550_v8, %v515_v12  ;;  %v344_v29 = vadd.f32 %v554_v9, %v515_v12 }
  0xe8   : > { %v319_v10 = vpop.f32.mrf.mxu0  ;;  %v335_v11 = vpop.f32.mrf.mxu1 }
  0xe9   : > { %v320_v15 = vadd.f32 %v515_v12, %v319_v10  ;;  %v351_v23 = vmax.f32 %v328_v17, 0.0  ;;  %v336_v24 = vadd.f32 %v515_v12, %v335_v11  ;;  %v355_v34 = vmax.f32 %v344_v29, 0.0 }
  0xea   : > { %v551_v13 = vpop.f32.mrf.mxu0  ;;  %v555_v14 = vpop.f32.mrf.mxu1 }
  0xeb   : > { %v349_v19 = vmax.f32 %v320_v15, 0.0  ;;  %v331_v20 = vadd.f32 %v551_v13, %v515_v12  ;;  %v353_v30 = vmax.f32 %v336_v24, 0.0 }
  0xec   : > { %v322_v16 = vpop.f32.mrf.mxu0  ;;  %v338_v22 = vpop.f32.mrf.mxu1 }
  0xed   : > { %v323_v18 = vadd.f32 %v515_v12, %v322_v16  ;;  %v352_v26 = vmax.f32 %v331_v20, 0.0  ;;  %v339_v28 = vadd.f32 %v515_v12, %v338_v22 }
  0xef   : > { %v350_v21 = vmax.f32 %v323_v18, 0.0  ;;  %v354_v32 = vmax.f32 %v339_v28, 0.0 }
  0xf1   : > { %v356_v25 = vadd.f32 %v350_v21, %v349_v19 }
  0xf3   : > { %v357_v27 = vadd.f32 %v356_v25, %v351_v23 }
  0xf5   : > { %v358_v31 = vadd.f32 %v357_v27, %v352_v26 }
  0xf7   : > { %v359_v33 = vadd.f32 %v358_v31, %v353_v30 }
  0xf9   : > { %v360_v35 = vadd.f32 %v359_v33, %v354_v32 }
  0xfb   : > { %v361_v36 = vadd.f32 %v360_v35, %v355_v34 }
  0xfd   : > { %v362_v37 = vrot.slane %v361_v36, 4 }
  0xff   : > { %v363_v38 = vadd.f32 %v362_v37, %v361_v36 }
 0x101   : > { %v364_v39 = vrot.slane %v363_v38, 2 }
 0x103   : > { %v365_v40 = vadd.f32 %v364_v39, %v363_v38 }
 0x105   : > { %v366_v41 = vrot.slane %v365_v40, 1 }
 0x107   : > { %v367_v42 = vadd.f32 %v366_v41, %v365_v40 }
 0x109   : > { %v368_v43 = vmul.f32 0.017857144, %v367_v42  ;;  %376 = vst [vmem:[%s194_s27] sm:$0x1] %v367_v42 }
 0x10a   : > { %629 = shalt.err (!%p626_p3)
}
 0x10b   : > { %s630_s11 = scalar_lea.hbm %s816_s5, 16  ;;  %s634_s14 = scalar_lea.hbm %s874_s3, 32 }
 0x10c   : > { %p631_p4 = scmp.ne.s32.totalorder %s816_s5, %s630_s11  ;;  %p635_p9 = scmp.lt.s32.totalorder %s816_s5, %s874_s3 }
 0x10d   : > { %p636_p10 = scmp.lt.s32.totalorder %s634_s14, %s630_s11 }
 0x10e   : > { %p632_p7 = pnand %p631_p4, %p773_p5 }
 0x10f   : > { %p637_p11 = por %p636_p10, %p635_p9 }
 0x110   : > { %p633_p8 = pneg %p632_p7 }
 0x112   : > { %p638_p12 = pnand %p637_p11, %p633_p8 }
 0x114   : > { %641 = shalt.err (!%p638_p12)
}
 0x115   : > { %564 = dma.vmem_to_hbm [thread:$0]  (%p773_p5), %s415_s28, 16, %s816_s5, %s398_s6   ;;  %v369_v44 = vsub.f32 %v349_v19, %v368_v43  ;;  %v370_v45 = vsub.f32 %v350_v21, %v368_v43  ;;  %v371_v46 = vsub.f32 %v351_v23, %v368_v43  ;;  %v372_v47 = vsub.f32 %v352_v26, %v368_v43 }
 0x116   : > { %v373_v50 = vsub.f32 %v353_v30, %v368_v43  ;;  %v374_v53 = vsub.f32 %v354_v32, %v368_v43  ;;  %v375_v56 = vsub.f32 %v355_v34, %v368_v43  ;;  %s200_s28 = scalar_lea.vmem [#allocation4], %s807_s22  ;;  %s425_s6 = scalar_lea.hbm %s875_s4, %s528_s23 }
 0x117   : > { %v377_v48 = vmul.f32 %v369_v44, %v369_v44  ;;  %v378_v49 = vmul.f32 %v370_v45, %v370_v45  ;;  %v379_v51 = vmul.f32 %v371_v46, %v371_v46  ;;  %v380_v54 = vmul.f32 %v372_v47, %v372_v47  ;;  %s427_s29 = sshll.u32 %s200_s28, 4  ;;  %s402_s7 = scalar_lea.sflag [#allocation5], %s807_s22  ;;  %s428_s29 = int_to_ptr.vmem [resolvable:$true] %s427_s29 }
 0x118   : > { %v381_v57 = vmul.f32 %v373_v50, %v373_v50  ;;  %v382_v59 = vmul.f32 %v374_v53, %v374_v53  ;;  %v383_v61 = vmul.f32 %v375_v56, %v375_v56  ;;  %s642_s8 = scalar_lea.vmem %s428_s29, 16  ;;  %s709_s9 = smov [#allocation4]  }
 0x119   : > { %v384_v52 = vadd.f32 %v378_v49, %v377_v48  ;;  %p643_p13 = scmp.ne.s32.totalorder %s428_s29, %s642_s8  ;;  %s646_s10 = sshll.u32 %s709_s9, 4  ;;  %s647_s10 = int_to_ptr.vmem [resolvable:$false] %s646_s10 }
 0x11a   : > { %s648_s11 = scalar_lea.vmem %s647_s10, 32  ;;  %p649_p2 = scmp.lt.s32.totalorder %s428_s29, %s647_s10 }
 0x11b   : > { %v385_v55 = vadd.f32 %v384_v52, %v379_v51  ;;  %p644_p0 = pnand %p643_p13, %p773_p5  ;;  %p650_p3 = scmp.lt.s32.totalorder %s648_s11, %s642_s8 }
 0x11d   : > { %v386_v58 = vadd.f32 %v385_v55, %v380_v54  ;;  %p645_p1 = pneg %p644_p0  ;;  %p651_p4 = por %p650_p3, %p649_p2 }
 0x11f   : > { %v387_v60 = vadd.f32 %v386_v58, %v381_v57  ;;  %p652_p7 = pnand %p651_p4, %p645_p1 }
 0x121   : > { %v388_v62 = vadd.f32 %v387_v60, %v382_v59 }
 0x123   : > { %v389_v63 = vadd.f32 %v388_v62, %v383_v61 }
 0x125   : > { %v390_v0 = vrot.slane %v389_v63, 4 }
 0x127   : > { %v391_v1 = vadd.f32 %v390_v0, %v389_v63 }
 0x129   : > { %v392_v2 = vrot.slane %v391_v1, 2 }
 0x12b   : > { %v393_v3 = vadd.f32 %v392_v2, %v391_v1 }
 0x12d   : > { %v394_v4 = vrot.slane %v393_v3, 1 }
 0x12f   : > { %v395_v5 = vadd.f32 %v394_v4, %v393_v3 }
 0x131   : > { %396 = vst [vmem:[%s200_s28] sm:$0x1] %v395_v5 }
 0x132   : > { %655 = shalt.err (!%p652_p7)
}
 0x133   : > { %s656_s19 = scalar_lea.hbm %s425_s6, 16  ;;  %s660_s12 = scalar_lea.hbm %s875_s4, 32 }
 0x134   : > { %p657_p8 = scmp.ne.s32.totalorder %s425_s6, %s656_s19  ;;  %p661_p11 = scmp.lt.s32.totalorder %s425_s6, %s875_s4 }
 0x135   : > { %p662_p12 = scmp.lt.s32.totalorder %s660_s12, %s656_s19 }
 0x136   : > { %p658_p9 = pnand %p657_p8, %p773_p5 }
 0x137   : > { %p663_p13 = por %p662_p12, %p661_p11 }
 0x138   : > { %p659_p10 = pneg %p658_p9 }
 0x13a   : > { %p664_p0 = pnand %p663_p13, %p659_p10 }
 0x13c   : > { %667 = shalt.err (!%p664_p0)
}
 0x13d   : > { %565 = dma.vmem_to_hbm [thread:$0]  (%p773_p5), %s428_s29, 16, %s425_s6, %s402_s7  }
 0x13e PF: > { %p575_p1 = scmp.ge.s32.totalorder %s706_s18, 2  ;;  %s439_s20 = sand.u32 1, %s694_s15  }
 0x13f   : > { %s440_s27 = scalar_lea.sflag [#allocation3], %s439_s20 }
 0x140   : > { %p569_p2 = pnand %p575_p1, %p777_p6 }
 0x142   : > { %p570_p3 = pneg %p569_p2 }
 0x144   : > { %685 = dma.done.wait (%p570_p3), %s440_s27, 16  }
 0x145   : > { %687 = vsyncadd (%p570_p3), %s440_s27, 4294967280  ;;  %s448_s28 = scalar_lea.sflag [#allocation5], %s439_s20 }
 0x146   : > { %689 = dma.done.wait (%p570_p3), %s448_s28, 16  }
 0x147   : > { %691 = vsyncadd (%p570_p3), %s448_s28, 4294967280  ;;  %p18_p5 = scmp.ge.s32.totalorder %s760_s21, 4   ;;  %s878_s15 = smov %s698_s16 }
 0x148   : > { %s879_s16 = smov %s702_s17  ;;  %s880_s17 = smov %s771_s24 }
 0x149   : > { %s881_s18 = smov %s760_s21  ;;  %20 = sbr.rel (!%p18_p5) target bundleno = 5 (0x5), region = 84 }
 0x14e   :  { %452 = vsyncpa [#allocation3], 1 }
 0x14f   :  { %454 = vsyncpa [#allocation3 + $0x1], 1 }
 0x150   :  { %455 = vsyncpa [#allocation5], 1 }
 0x151   :  { %457 = vsyncpa [#allocation5 + $0x1], 1 }

</bundles_post_ra>
